<compile_context>
chip_gen: v7x
topology: tpu7x:2x2x1
jax: 0.10.0
libtpu: 0.0.40
codegen_flags: <defaults>
</compile_context>

<pallas_src>
import jax
import jax.numpy as jnp
from jax import lax
from jax.experimental import pallas as pl
from jax.experimental.pallas import tpu as pltpu


def _mlp_kernel(x_ref, w_ref, b_ref, o_ref):
    # x_ref: (C, t_hw) activation tile in its native channel-major layout
    # w_ref: (C, E)    VMEM-resident weight
    # b_ref: (1, E)    VMEM-resident bias (f32)
    # o_ref: (t_hw, E) output tile
    acc = lax.dot_general(
        x_ref[...], w_ref[...],
        dimension_numbers=(((0,), (0,)), ((), ())),   # contract C; transposed-LHS on MXU
        preferred_element_type=jnp.float32,
    )                                                 # (t_hw, E) f32
    o_ref[...] = (acc + b_ref[...]).astype(o_ref.dtype)


def _round_up(x, m):
    return ((x + m - 1) // m) * m


def _vmem_limit_bytes():
    """Per-core VMEM limit derived from the hardware, with headroom."""
    cap = None
    try:
        cap = getattr(pltpu.get_tpu_info(), "vmem_capacity_bytes", None)
    except Exception:
        cap = None
    if not cap or cap <= 0:
        cap = 64 * 1024 * 1024        # v7x per-TC minimum; v5e/v6e have 128 MiB
    return int(cap) * 3 // 4          # headroom for compiler scratch / semaphores


def _pick_hw_tile(hw, budget_tokens, batch):
    """Largest token tile along HW that tiles HW exactly and fits the budget."""
    budget_tokens = max(128, (int(budget_tokens) // 128) * 128)
    if hw <= budget_tokens:
        t = hw
    else:
        t = 0
        cand = budget_tokens
        while cand >= 128:            # largest multiple-of-128 divisor of HW
            if hw % cand == 0:
                t = cand
                break
            cand -= 128
        if t == 0:
            return 0                  # caller falls back to padding (rare)
    # Give a multi-TensorCore chip (v7x) at least 2 grid steps when trivially possible.
    if batch * max(hw // max(t, 1), 1) < 2 and t % 256 == 0:
        t //= 2
    return t


def mlp_forward(x_nchw, weight, bias, *, t_hw=None):
    """SegFormer MLP / linear embedding.

    x_nchw : (B, C, H, W) activations (f32 or bf16)
    weight : (E, C) torch-style nn.Linear weight
    bias   : (E,)
    Returns (B, H*W, E), matching `x.flatten(2).transpose(1, 2) @ W.T + b`.
    """
    B, C, H, W = x_nchw.shape
    E = weight.shape[0]
    HW = H * W
    dtype = x_nchw.dtype
    in_isz = jnp.dtype(dtype).itemsize
    out_isz = in_isz

    # Parameters: (C, E) weight in the activation dtype (one-time tiny copy), f32 bias.
    w = weight.T.astype(dtype)                    # (C, E)
    b = bias.reshape(1, E).astype(jnp.float32)    # (1, E)

    # Native-layout activation view: (B, C, HW) -- a free reshape, NOT a transpose.
    x = x_nchw.reshape(B, C, HW)

    # --- VMEM budgeting with real (sublane, lane) tile padding ---------------
    vmem_limit = _vmem_limit_bytes()
    sub = {4: 8, 2: 16, 1: 32}.get(in_isz, 8)     # sublane granularity for the dtype
    c_pad = _round_up(C, sub)
    e_pad = _round_up(E, 128)
    resident = 2 * (c_pad * e_pad * in_isz + 8 * e_pad * 4)   # dbl-buffered weight + bias
    per_tok = 2 * (c_pad * in_isz + e_pad * out_isz)          # dbl-buffered x + out, per token
    budget_tokens = max(vmem_limit - resident - (2 << 20), per_tok) // per_tok
    budget_tokens = min(budget_tokens, 8192)                  # diminishing returns past a few K

    if t_hw is None:
        t_hw = _pick_hw_tile(HW, budget_tokens, B)
    else:
        t_hw = int(t_hw)

    hw_run = HW
    if t_hw == 0 or HW % t_hw != 0:
        # Rare fallback: HW has no lane-aligned divisor under the budget -> pad once.
        hw_run = _round_up(HW, 128)
        t_hw = 128
        cand = max(128, (budget_tokens // 128) * 128)
        while cand >= 128:
            if hw_run % cand == 0:
                t_hw = cand
                break
            cand -= 128
        x = jnp.pad(x, ((0, 0), (0, 0), (0, hw_run - HW)))

    n_tiles = hw_run // t_hw

    out = pl.pallas_call(
        _mlp_kernel,
        out_shape=jax.ShapeDtypeStruct((B, hw_run, E), dtype),
        grid_spec=pltpu.PrefetchScalarGridSpec(
            num_scalar_prefetch=0,
            grid=(B, n_tiles),
            in_specs=[
                pl.BlockSpec((None, C, t_hw), lambda bi, j: (bi, 0, j)),  # fused NCHW read
                pl.BlockSpec((C, E), lambda bi, j: (0, 0)),               # resident weight
                pl.BlockSpec((1, E), lambda bi, j: (0, 0)),               # resident bias
            ],
            out_specs=pl.BlockSpec((None, t_hw, E), lambda bi, j: (bi, j, 0)),
        ),
        compiler_params=pltpu.CompilerParams(
            dimension_semantics=("parallel", "parallel"),
            vmem_limit_bytes=vmem_limit,
        ),
    )(x, w, b)

    if hw_run != HW:
        out = out[:, :HW, :]
    return out


if __name__ == "__main__":
    # Small shapes consistent with the module: input_dim=C=4, embed_dim=E=32.
    B, C, H, W = 2, 4, 16, 16
    E = 32

    key = jax.random.PRNGKey(0)
    kx, kw, kb = jax.random.split(key, 3)
    x = jax.random.normal(kx, (B, C, H, W), dtype=jnp.float32)
    weight = jax.random.normal(kw, (E, C), dtype=jnp.float32) * 0.02  # torch (E, C)
    bias = jax.random.normal(kb, (E,), dtype=jnp.float32) * 0.02      # torch (E,)

    # --- f32 path (module default dtype): tight correctness check ------------
    out = jax.block_until_ready(mlp_forward(x, weight, bias))
    x_tok = jnp.transpose(x.reshape(B, C, H * W), (0, 2, 1))          # reference only
    ref = x_tok @ weight.T + bias
    assert out.shape == (B, H * W, E), out.shape
    assert jnp.allclose(out, ref, atol=1e-5), float(jnp.max(jnp.abs(out - ref)))

    # --- bf16 path (deployment dtype: halves HBM traffic, f32 accumulation) --
    xb = x.astype(jnp.bfloat16)
    wb = weight.astype(jnp.bfloat16)
    out_bf16 = jax.block_until_ready(mlp_forward(xb, wb, bias))
    ref_bf16 = (jnp.transpose(xb.astype(jnp.float32).reshape(B, C, H * W), (0, 2, 1))
                @ wb.astype(jnp.float32).T + bias)
    assert out_bf16.shape == (B, H * W, E), out_bf16.shape
    err = float(jnp.max(jnp.abs(out_bf16.astype(jnp.float32) - ref_bf16)))
    assert err < 2e-2, err

    print("KERNEL_OK")
</pallas_src>

<mosaic_0001>
module attributes {stable_mosaic.version = 11 : i64} {
  func.func @_mlp_kernel(%arg0: i32, %arg1: i32, %arg2: memref<1x4x256xf32, #tpu.memory_space<vmem>>, %arg3: memref<4x32xf32, #tpu.memory_space<vmem>>, %arg4: memref<1x32xf32, #tpu.memory_space<vmem>>, %arg5: memref<1x256x32xf32, #tpu.memory_space<vmem>>) attributes {dimension_semantics = [#tpu.dimension_semantics<parallel>, #tpu.dimension_semantics<parallel>], iteration_bounds = array<i64: 2, 1>, scalar_prefetch = 0 : i64, scratch_operands = 0 : i64, tpu.core_type = #tpu.core_type<tc>, window_params = [{transform_indices = @transform_0, window_bounds = array<i64: 1, 4, 256>}, {pipeline_mode = #tpu.pipeline_mode<synchronous>, transform_indices = @transform_1, window_bounds = array<i64: 4, 32>}, {pipeline_mode = #tpu.pipeline_mode<synchronous>, transform_indices = @transform_2, window_bounds = array<i64: 1, 32>}, {transform_indices = @transform_3, window_bounds = array<i64: 1, 256, 32>}]} {
    %c0 = arith.constant 0 : index
    %c0_0 = arith.constant 0 : index
    %c0_1 = arith.constant 0 : index
    %0 = vector.load %arg2[%c0, %c0_0, %c0_1] : memref<1x4x256xf32, #tpu.memory_space<vmem>>, vector<1x4x256xf32>
    %1 = vector.shape_cast %0 : vector<1x4x256xf32> to vector<4x256xf32>
    %c0_2 = arith.constant 0 : index
    %c0_3 = arith.constant 0 : index
    %2 = vector.load %arg3[%c0_2, %c0_3] : memref<4x32xf32, #tpu.memory_space<vmem>>, vector<4x32xf32>
    %cst = arith.constant dense<0.000000e+00> : vector<256x32xf32>
    %3 = tpu.matmul %1, %2, %cst {dimension_numbers = #tpu.dot_dimension_numbers<[0], [0], [1], [1], [0, 1, 1, 1], [], []>} : vector<4x256xf32>, vector<4x32xf32>, vector<256x32xf32> -> vector<256x32xf32>
    %c0_4 = arith.constant 0 : index
    %c0_5 = arith.constant 0 : index
    %4 = vector.load %arg4[%c0_4, %c0_5] : memref<1x32xf32, #tpu.memory_space<vmem>>, vector<1x32xf32>
    %5 = vector.broadcast %4 : vector<1x32xf32> to vector<256x32xf32>
    %6 = arith.addf %3, %5 : vector<256x32xf32>
    %c0_6 = arith.constant 0 : index
    %c0_7 = arith.constant 0 : index
    %c0_8 = arith.constant 0 : index
    %7 = vector.load %arg5[%c0_6, %c0_7, %c0_8] : memref<1x256x32xf32, #tpu.memory_space<vmem>>, vector<1x256x32xf32>
    %8 = vector.shape_cast %7 : vector<1x256x32xf32> to vector<256x32xf32>
    %9 = vector.shape_cast %6 : vector<256x32xf32> to vector<1x256x32xf32>
    tpu.vector_store %arg5[%c0_6, %c0_7, %c0_8], %9 {strides = array<i32>} : memref<1x256x32xf32, #tpu.memory_space<vmem>>, vector<1x256x32xf32>,
    return
  }
  func.func @transform_0(%arg0: i32, %arg1: i32) -> (i32, i32, i32) {
    %c0_i32 = arith.constant 0 : i32
    %c0_i32_0 = arith.constant 0 : i32
    return %arg0, %c0_i32, %arg1 : i32, i32, i32
  }
  func.func @transform_1(%arg0: i32, %arg1: i32) -> (i32, i32) {
    %c0_i32 = arith.constant 0 : i32
    %c0_i32_0 = arith.constant 0 : i32
    %c0_i32_1 = arith.constant 0 : i32
    return %c0_i32, %c0_i32_0 : i32, i32
  }
  func.func @transform_2(%arg0: i32, %arg1: i32) -> (i32, i32) {
    %c0_i32 = arith.constant 0 : i32
    %c0_i32_0 = arith.constant 0 : i32
    %c0_i32_1 = arith.constant 0 : i32
    return %c0_i32, %c0_i32_0 : i32, i32
  }
  func.func @transform_3(%arg0: i32, %arg1: i32) -> (i32, i32, i32) {
    %c0_i32 = arith.constant 0 : i32
    %c0_i32_0 = arith.constant 0 : i32
    return %arg0, %arg1, %c0_i32 : i32, i32, i32
  }
}

</mosaic_0001>

<bundles_post_ra>
// kernel: tpu_custom_call.1
= control target key start
LH: loop header
LB: loop body
LE: loop exit
PB: predicated region body
PF: predicated region fallthrough
CT: control target
= control target key end

     0   :  { %8 = vsyncpa [#allocation3], 0  ;;  %s1408_s0 = inlined_call_operand.hbm [shape: f32[2,4,256], index: 0, kind: input, shape index: {}]   ;;  %s1409_s1 = inlined_call_operand.hbm [shape: f32[4,32], index: 1, kind: input, shape index: {}]   ;;  %s1410_s2 = inlined_call_operand.vmem [shape: f32[1,32], index: 2, kind: input, shape index: {}]   ;;  %s1411_s3 = inlined_call_operand.vmem [shape: f32[2,256,32], index: 3, kind: output, shape index: {}]  }
   0x1   :  { %10 = vsyncpa [#allocation3 + $0x1], 0 }
   0x2   :  { %11 = vsyncpa [#allocation5], 0  ;;  %s1110_s12 = smov 0   ;;  %s1112_s13 = smov 0  }
   0x3   :  { %s1114_s14 = smov 0   ;;  %s1116_s15 = smov 0  }
   0x4   :  { %s1118_s16 = smov 0   ;;  %s1120_s17 = smov 0  }
   0x5 LB: > { %s770_s18 = sadd.s32 4294967295, %s1086_s17   ;;  %p51_p0 = scmp.ne.s32.totalorder %s1070_s13, %s1066_s12  ;;  %s1086_s17 = sphi %s1120_s17, %s17_s17   ;;  %s1082_s16 = sphi %s1118_s16, %s1430_s16   ;;  %s1078_s15 = sphi %s1116_s15, %s1429_s15   ;;  %s1074_s14 = sphi %s1114_s14, %s1428_s14   ;;  %s1070_s13 = sphi %s1112_s13, %s1427_s13   ;;  %s1066_s12 = sphi %s1110_s12, %s1426_s12  }
   0x6   : > { %p1140_p1 = scmp.eq.s32.totalorder %s770_s18, 0  ;;  %p772_p2 = scmp.ge.s32.totalorder %s1086_s17, 1 }
   0x7   : > { %p132_p3 = scmp.lt.s32.totalorder %s1086_s17, 3  ;;  %s1088_s22 = smov [#allocation4]  }
   0x8   : > { %s1416_s19 = scalar_select %p1140_p1, 1, 0 }
   0x9   : > { %p1148_p4 = por %p1140_p1, %p51_p0  ;;  %p1152_p5 = pnand %p772_p2, %p132_p3 }
   0xa   : > { %s145_s23 = sshll.u32 %s1088_s22, 4  ;;  %s29_s25 = sadd.s32 1, %s1082_s16  ;;  %s146_s23 = int_to_ptr.vmem [resolvable:$true] %s145_s23 }
   0xb   : > { %s1417_s20 = scalar_select %p1148_p4, 1, 0 }
   0xc   : > { %s1418_s21 = scalar_select %p1152_p5, 1, 0 }
   0xd   : > { %p912_p6 = pneg %p1152_p5  ;;  %s38_s26 = sadd.s32 1, %s1074_s14 }
   0xe   : > { %p1166_p8 = scmp.ge.s32.totalorder %s29_s25, 2  ;;  %s974_s30 = scalar_lea.hbm %s1409_s1, 64 }
   0xf   : > { %p1160_p7 = pnand %p912_p6, %p1140_p1  ;;  %p975_p9 = scmp.ne.s32.totalorder %s1409_s1, %s974_s30 }
  0x10   : > { %s1420_s27 = scalar_select %p1166_p8, 1, 0 }
  0x11   : > { %p976_p10 = pneg %p1160_p7  ;;  %p981_p13 = scmp.lt.u32.totalorder %s974_s30, %s1409_s1 }
  0x13   : > { %p977_p11 = pnand %p976_p10, %p975_p9 }
  0x15   : > { %p978_p12 = pneg %p977_p11 }
  0x17   : > { %p983_p0 = pnand %p981_p13, %p978_p12 }
  0x19   : > { %986 = shalt.err (!%p983_p0)
}
  0x1a   : > { %s987_s8 = scalar_lea.vmem %s146_s23, 64  ;;  %p995_p1 = scmp.lt.s32.totalorder %s146_s23, %s146_s23 }
  0x1b   : > { %p988_p2 = scmp.ne.s32.totalorder %s146_s23, %s987_s8  ;;  %p996_p4 = scmp.lt.s32.totalorder %s987_s8, %s987_s8 }
  0x1d   : > { %p990_p3 = pnand %p988_p2, %p976_p10  ;;  %p997_p5 = por %p996_p4, %p995_p1 }
  0x1f   : > { %p991_p6 = pneg %p990_p3 }
  0x21   : > { %p998_p8 = pnand %p997_p5, %p991_p6 }
  0x23   : > { %1001 = shalt.err (!%p998_p8)
}
  0x24   : > { %915 = dma.hbm_to_vmem [thread:$0]  (!%p1160_p7), %s1409_s1, 64, %s146_s23, [#allocation5]  }
  0x25   : > { %p1421_p9 = scmp.ne.s32.totalorder %s1420_s27, 0  ;;  %p45_p1 = scmp.ne.s32.totalorder %s1074_s14, %s1070_s13 }
  0x26   : > { %p46_p4 = scmp.eq.s32.totalorder %s1086_s17, 0  ;;  %p921_p5 = scmp.lt.s32.totalorder %s1086_s17, 2 }
  0x27   : > { %s1432_s25 = smov (%p1421_p9, %s29_s25), 0  ;;  %s159_s12 = sand.u32 1, %s1074_s14  }
  0x28   : > { %s33_s11 = ssub.s32 %s1082_s16, %s1432_s25  ;;  %p47_p10 = por %p46_p4, %p45_p1 }
  0x29   : > { %p36_p8 = scmp.eq.s32.totalorder %s33_s11, 0  ;;  %s819_s18 = sshll.u32 %s1082_s16, 7 }
  0x2a   : > { %s775_s24 = sshll.u32 %s159_s12, 3  ;;  %s1206_s23 = scalar_lea.hbm %s1408_s0, %s819_s18 }
  0x2b   : > { %s1201_s22 = scalar_select %p36_p8, %s1074_s14, %s38_s26  }
  0x2c   : > { %s163_s27 = scalar_lea.vmem [#allocation2], %s775_s24  ;;  %p1208_p7 = pnand %p921_p5, %p47_p10 }
  0x2d   : > { %s173_s30 = sshll.u32 %s163_s27, 4  ;;  %s160_s26 = scalar_lea.sflag [#allocation3], %s159_s12  ;;  %s1212_s30 = int_to_ptr.vmem [resolvable:$true] %s173_s30 }
  0x2e   : > { %s1002_s5 = scalar_lea.hbm %s1206_s23, 128  ;;  %p1004_p12 = pneg %p1208_p7 }
  0x2f   : > { %p1003_p11 = scmp.ne.s32.totalorder %s1206_s23, %s1002_s5  ;;  %s1007_s8 = scalar_lea.hbm %s1408_s0, 256 }
  0x30   : > { %p1008_p2 = scmp.lt.u32.totalorder %s1206_s23, %s1408_s0  ;;  %p1009_p3 = scmp.lt.u32.totalorder %s1007_s8, %s1002_s5 }
  0x31   : > { %p1005_p13 = pnand %p1004_p12, %p1003_p11  ;;  %p1011_p9 = scmp.lt.u32.totalorder %s1002_s5, %s1206_s23 }
  0x32   : > { %p1010_p6 = por %p1009_p3, %p1008_p2 }
  0x33   : > { %p1006_p0 = pneg %p1005_p13 }
  0x34   : > { %p1012_p1 = por %p1011_p9, %p1010_p6 }
  0x36   : > { %p1013_p4 = pnand %p1012_p1, %p1006_p0 }
  0x38   : > { %1016 = shalt.err (!%p1013_p4)
}
  0x39   : > { %s1017_s11 = scalar_lea.vmem %s1212_s30, 128  ;;  %s1089_s12 = smov [#allocation2]  }
  0x3a   : > { %p1018_p5 = scmp.ne.s32.totalorder %s1212_s30, %s1017_s11  ;;  %s1022_s18 = sshll.u32 %s1089_s12, 4  ;;  %s1023_s18 = int_to_ptr.vmem [resolvable:$false] %s1022_s18 }
  0x3b   : > { %s1024_s24 = scalar_lea.vmem %s1023_s18, 256  ;;  %p1025_p11 = scmp.lt.s32.totalorder %s1212_s30, %s1023_s18 }
  0x3c   : > { %p1020_p8 = pnand %p1018_p5, %p1004_p12  ;;  %p1026_p13 = scmp.lt.s32.totalorder %s1024_s24, %s1017_s11 }
  0x3e   : > { %p1021_p10 = pneg %p1020_p8  ;;  %p1027_p2 = por %p1026_p13, %p1025_p11 }
  0x40   : > { %p1028_p3 = pnand %p1027_p2, %p1021_p10 }
  0x42   : > { %1031 = shalt.err (!%p1028_p3)
}
  0x43   : > { %919 = dma.hbm_to_vmem [thread:$0]  (!%p1208_p7), %s1206_s23, 128, %s1212_s30, %s160_s26  }
  0x44   : > { %p1423_p0 = scmp.ne.s32.totalorder %s1418_s21, 0 }
  0x45   : > { %s184_s28 = sand.u32 (!%p1423_p0), 1, %s1070_s13   ;;  %p1424_p12 = scmp.ne.s32.totalorder (!%p1423_p0), %s1417_s20, 0 }
  0x46   : > { %182 = sbr.rel (%p1423_p0) target bundleno = 551 (0x227), region = 32  ;;  %s779_s29 = sshll.u32 (!%p1423_p0), %s184_s28, 3 }
  0x47   : > { %s185_s27 = scalar_lea.sflag (!%p1423_p0), [#allocation3], %s184_s28  ;;  %s188_s5 = scalar_lea.vmem (!%p1423_p0), [#allocation2], %s779_s29 }
  0x4d   : > { %1057 = dma.done.wait (%p1424_p12), %s185_s27, 128  }
  0x4e   : > { %1059 = vsyncadd (%p1424_p12), %s185_s27, 4294967168  ;;  %p1425_p6 = scmp.ne.s32.totalorder %s1416_s19, 0 }
  0x50   : > { %1061 = dma.done.wait (%p1425_p6), [#allocation5], 64  }
  0x51   : > { %1063 = vsyncadd (%p1425_p6), [#allocation5], 4294967232  ;;  %v230_v0 = vld [vmem:[%s188_s5] sm:$0xff]  ;;  %v231_v1 = vld [vmem:[#allocation4] sm:$0xf]  ;;  %vm403_vm0 = vcmask 1043456  }
  0x52   : > { %242 = vxpose.xlu0.b32.start.end [1/1] (short) %v230_v0, 128  ;;  %854 = vmatprep.subr.msk.mxu0 %vm403_vm0, %v231_v1  ;;  %v240_v2 = vcombine.high %v230_v0, %v230_v0  ;;  %vm306_vm1 = vcmask 31744   ;;  %p221_p7 = scmp.lt.s32.totalorder %s1078_s15, 1  ;;  %v1287_v35 = vld [vmem:[%s1410_s2] ss:$0 sm:$0xff]  ;;  %vm632_vm2 = vcmask 261120  }
  0x53   : > { %904 = vmatprep.subr.msk.mxu1 %vm403_vm0, %v231_v1  ;;  %855 = vmatpush3.msk.msra.mxu0 %vm403_vm0, %v231_v1 }
  0x54   : > { %905 = vmatpush3.msk.msra.mxu1 %vm403_vm0, %v231_v1  ;;  %s1434_s15 = smov (!%p221_p7, %s1078_s15), 1 }
  0x55   : > { %s820_s19 = sshll.u32 %s1434_s15, 8 }
  0x56   : > { %s1292_s4 = scalar_lea.vmem %s1411_s3, %s820_s19 }
  0x8f   : > { %274 = vxpose.xlu0.b32.start.end [1/1] (short) %v240_v2, 128 }
  0xd2   : > { %v258_v3 = vpop.trf.xlu0 }
  0xd3   : > { %856 = vmatprep.mubr.msk.f32.mxu0 %vm306_vm1, %v258_v3 }
  0xd6   : > { %v259_v4 = vpop.trf.xlu0 }
  0xd7   : > { %857 = vmatmul.mubr.msk.f32.vlgmr.msra.gmra.mrb[0].mxu0 %vm306_vm1, %v259_v4 }
  0xda   : > { %v260_v5 = vpop.trf.xlu0 }
  0xdb   : > { %859 = vmatprep.mubr.msk.f32.mxu0 %vm306_vm1, %v260_v5 }
  0xde   : > { %v261_v6 = vpop.trf.xlu0 }
  0xdf   : > { %860 = vmatmul.mubr.msk.f32.gmra.mrb[2].mxu0 %vm306_vm1, %v261_v6 }
  0xe2   : > { %v262_v7 = vpop.trf.xlu0 }
  0xe3   : > { %862 = vmatprep.mubr.msk.f32.mxu0 %vm306_vm1, %v262_v7 }
  0xe6   : > { %v263_v8 = vpop.trf.xlu0 }
  0xe7   : > { %863 = vmatmul.mubr.msk.f32.gmra.mrb[4].mxu0 %vm306_vm1, %v263_v8 }
  0xea   : > { %v264_v9 = vpop.trf.xlu0 }
  0xeb   : > { %865 = vmatprep.mubr.msk.f32.mxu0 %vm306_vm1, %v264_v9 }
  0xee   : > { %v265_v10 = vpop.trf.xlu0 }
  0xef   : > { %866 = vmatmul.mubr.msk.f32.gmra.mrb[6].mxu0 %vm306_vm1, %v265_v10 }
  0xf2   : > { %v266_v11 = vpop.trf.xlu0 }
  0xf3   : > { %868 = vmatprep.mubr.msk.f32.mxu0 %vm306_vm1, %v266_v11 }
  0xf6   : > { %v267_v12 = vpop.trf.xlu0 }
  0xf7   : > { %869 = vmatmul.mubr.msk.f32.gmra.mrb[8].mxu0 %vm306_vm1, %v267_v12 }
  0xfa   : > { %v268_v13 = vpop.trf.xlu0 }
  0xfb   : > { %871 = vmatprep.mubr.msk.f32.mxu0 %vm306_vm1, %v268_v13 }
  0xfe   : > { %v269_v14 = vpop.trf.xlu0 }
  0xff   : > { %872 = vmatmul.mubr.msk.f32.gmra.mrb[10].mxu0 %vm306_vm1, %v269_v14 }
 0x102   : > { %v270_v15 = vpop.trf.xlu0 }
 0x103   : > { %874 = vmatprep.mubr.msk.f32.mxu0 %vm306_vm1, %v270_v15 }
 0x106   : > { %v271_v16 = vpop.trf.xlu0 }
 0x107   : > { %875 = vmatmul.mubr.msk.f32.gmra.mrb[12].mxu0 %vm306_vm1, %v271_v16 }
 0x10a   : > { %v272_v17 = vpop.trf.xlu0 }
 0x10b   : > { %877 = vmatprep.mubr.msk.f32.mxu0 %vm306_vm1, %v272_v17 }
 0x10e   : > { %v273_v18 = vpop.trf.xlu0 }
 0x10f   : > { %878 = vmatmul.mubr.msk.f32.gmra.mrb[14].mxu0 %vm306_vm1, %v273_v18 }
 0x112   : > { %v290_v19 = vpop.trf.xlu0 }
 0x113   : > { %880 = vmatprep.mubr.msk.f32.mxu1 %vm306_vm1, %v290_v19 }
 0x116   : > { %v291_v20 = vpop.trf.xlu0 }
 0x117   : > { %881 = vmatmul.mubr.msk.f32.vlgmr.msra.gmra.mrb[0].mxu1 %vm306_vm1, %v291_v20 }
 0x11a   : > { %v292_v21 = vpop.trf.xlu0 }
 0x11b   : > { %883 = vmatprep.mubr.msk.f32.mxu1 %vm306_vm1, %v292_v21 }
 0x11e   : > { %v293_v22 = vpop.trf.xlu0 }
 0x11f   : > { %884 = vmatmul.mubr.msk.f32.gmra.mrb[2].mxu1 %vm306_vm1, %v293_v22 }
 0x122   : > { %v294_v23 = vpop.trf.xlu0 }
 0x123   : > { %886 = vmatprep.mubr.msk.f32.mxu1 %vm306_vm1, %v294_v23 }
 0x126   : > { %v295_v24 = vpop.trf.xlu0 }
 0x127   : > { %887 = vmatmul.mubr.msk.f32.gmra.mrb[4].mxu1 %vm306_vm1, %v295_v24 }
 0x12a   : > { %v296_v25 = vpop.trf.xlu0 }
 0x12b   : > { %889 = vmatprep.mubr.msk.f32.mxu1 %vm306_vm1, %v296_v25 }
 0x12e   : > { %v297_v26 = vpop.trf.xlu0 }
 0x12f   : > { %890 = vmatmul.mubr.msk.f32.gmra.mrb[6].mxu1 %vm306_vm1, %v297_v26 }
 0x132   : > { %v298_v27 = vpop.trf.xlu0 }
 0x133   : > { %892 = vmatprep.mubr.msk.f32.mxu1 %vm306_vm1, %v298_v27 }
 0x136   : > { %v299_v28 = vpop.trf.xlu0 }
 0x137   : > { %893 = vmatmul.mubr.msk.f32.gmra.mrb[8].mxu1 %vm306_vm1, %v299_v28 }
 0x13a   : > { %v300_v29 = vpop.trf.xlu0 }
 0x13b   : > { %895 = vmatprep.mubr.msk.f32.mxu1 %vm306_vm1, %v300_v29 }
 0x13e   : > { %v301_v30 = vpop.trf.xlu0 }
 0x13f   : > { %896 = vmatmul.mubr.msk.f32.gmra.mrb[10].mxu1 %vm306_vm1, %v301_v30 }
 0x142   : > { %v302_v31 = vpop.trf.xlu0 }
 0x143   : > { %898 = vmatprep.mubr.msk.f32.mxu1 %vm306_vm1, %v302_v31 }
 0x146   : > { %v303_v32 = vpop.trf.xlu0 }
 0x147   : > { %899 = vmatmul.mubr.msk.f32.gmra.mrb[12].mxu1 %vm306_vm1, %v303_v32 }
 0x14a   : > { %v304_v33 = vpop.trf.xlu0 }
 0x14b   : > { %901 = vmatprep.mubr.msk.f32.mxu1 %vm306_vm1, %v304_v33 }
 0x14e   : > { %v305_v34 = vpop.trf.xlu0 }
 0x14f   : > { %902 = vmatmul.mubr.msk.f32.gmra.mrb[14].mxu1 %vm306_vm1, %v305_v34 }
 0x1aa   : > { %v858_v36 = vpop.f32.mrb[0].mxu0 }
 0x1ab   : > { %v479_v37 = vadd.f32 %v858_v36, %v1287_v35  ;;  %v473_v38 = vpop.f32.mrb[1].mxu0 }
 0x1ac   : > { %v474_v39 = vadd.f32 %v1287_v35, %v473_v38 }
 0x1ad   : > { %634 = vst.msk [vmem:[%s1292_s4 + $0x8] sm:$0xff] %vm632_vm2, %v479_v37 }
 0x1ae   : > { %633 = vst.msk [vmem:[%s1292_s4] sm:$0xff] %vm632_vm2, %v474_v39 }
 0x1b2   : > { %v861_v40 = vpop.f32.mrb[2].mxu0 }
 0x1b3   : > { %v489_v41 = vadd.f32 %v861_v40, %v1287_v35  ;;  %v483_v42 = vpop.f32.mrb[3].mxu0 }
 0x1b4   : > { %v484_v43 = vadd.f32 %v1287_v35, %v483_v42 }
 0x1b5   : > { %636 = vst.msk [vmem:[%s1292_s4 + $0x18] sm:$0xff] %vm632_vm2, %v489_v41 }
 0x1b6   : > { %635 = vst.msk [vmem:[%s1292_s4 + $0x10] sm:$0xff] %vm632_vm2, %v484_v43 }
 0x1ba   : > { %v864_v44 = vpop.f32.mrb[4].mxu0 }
 0x1bb   : > { %v499_v45 = vadd.f32 %v864_v44, %v1287_v35  ;;  %v493_v46 = vpop.f32.mrb[5].mxu0 }
 0x1bc   : > { %v494_v47 = vadd.f32 %v1287_v35, %v493_v46 }
 0x1bd   : > { %638 = vst.msk [vmem:[%s1292_s4 + $0x28] sm:$0xff] %vm632_vm2, %v499_v45 }
 0x1be   : > { %637 = vst.msk [vmem:[%s1292_s4 + $0x20] sm:$0xff] %vm632_vm2, %v494_v47 }
 0x1c2   : > { %v867_v48 = vpop.f32.mrb[6].mxu0 }
 0x1c3   : > { %v509_v49 = vadd.f32 %v867_v48, %v1287_v35  ;;  %v503_v50 = vpop.f32.mrb[7].mxu0 }
 0x1c4   : > { %v504_v51 = vadd.f32 %v1287_v35, %v503_v50 }
 0x1c5   : > { %640 = vst.msk [vmem:[%s1292_s4 + $0x38] sm:$0xff] %vm632_vm2, %v509_v49 }
 0x1c6   : > { %639 = vst.msk [vmem:[%s1292_s4 + $0x30] sm:$0xff] %vm632_vm2, %v504_v51 }
 0x1ca   : > { %v870_v52 = vpop.f32.mrb[8].mxu0 }
 0x1cb   : > { %v519_v53 = vadd.f32 %v870_v52, %v1287_v35  ;;  %v513_v54 = vpop.f32.mrb[9].mxu0 }
 0x1cc   : > { %v514_v55 = vadd.f32 %v1287_v35, %v513_v54 }
 0x1cd   : > { %642 = vst.msk [vmem:[%s1292_s4 + $0x48] sm:$0xff] %vm632_vm2, %v519_v53 }
 0x1ce   : > { %641 = vst.msk [vmem:[%s1292_s4 + $0x40] sm:$0xff] %vm632_vm2, %v514_v55 }
 0x1d2   : > { %v873_v56 = vpop.f32.mrb[10].mxu0 }
 0x1d3   : > { %v529_v57 = vadd.f32 %v873_v56, %v1287_v35  ;;  %v523_v58 = vpop.f32.mrb[11].mxu0 }
 0x1d4   : > { %v524_v59 = vadd.f32 %v1287_v35, %v523_v58 }
 0x1d5   : > { %644 = vst.msk [vmem:[%s1292_s4 + $0x58] sm:$0xff] %vm632_vm2, %v529_v57 }
 0x1d6   : > { %643 = vst.msk [vmem:[%s1292_s4 + $0x50] sm:$0xff] %vm632_vm2, %v524_v59 }
 0x1da   : > { %v876_v60 = vpop.f32.mrb[12].mxu0 }
 0x1db   : > { %v539_v61 = vadd.f32 %v876_v60, %v1287_v35  ;;  %v533_v62 = vpop.f32.mrb[13].mxu0 }
 0x1dc   : > { %v534_v63 = vadd.f32 %v1287_v35, %v533_v62 }
 0x1dd   : > { %646 = vst.msk [vmem:[%s1292_s4 + $0x68] sm:$0xff] %vm632_vm2, %v539_v61 }
 0x1de   : > { %645 = vst.msk [vmem:[%s1292_s4 + $0x60] sm:$0xff] %vm632_vm2, %v534_v63 }
 0x1e2   : > { %v879_v0 = vpop.f32.mrb[14].mxu0 }
 0x1e3   : > { %v549_v1 = vadd.f32 %v879_v0, %v1287_v35  ;;  %v543_v2 = vpop.f32.mrb[15].mxu0 }
 0x1e4   : > { %v544_v3 = vadd.f32 %v1287_v35, %v543_v2 }
 0x1e5   : > { %648 = vst.msk [vmem:[%s1292_s4 + $0x78] sm:$0xff] %vm632_vm2, %v549_v1 }
 0x1e6   : > { %647 = vst.msk [vmem:[%s1292_s4 + $0x70] sm:$0xff] %vm632_vm2, %v544_v3 }
 0x1ea   : > { %v882_v4 = vpop.f32.mrb[0].mxu1 }
 0x1eb   : > { %v559_v5 = vadd.f32 %v882_v4, %v1287_v35  ;;  %v553_v6 = vpop.f32.mrb[1].mxu1 }
 0x1ec   : > { %v554_v7 = vadd.f32 %v1287_v35, %v553_v6 }
 0x1ed   : > { %650 = vst.msk [vmem:[%s1292_s4 + $0x88] sm:$0xff] %vm632_vm2, %v559_v5 }
 0x1ee   : > { %649 = vst.msk [vmem:[%s1292_s4 + $0x80] sm:$0xff] %vm632_vm2, %v554_v7 }
 0x1f2   : > { %v885_v8 = vpop.f32.mrb[2].mxu1 }
 0x1f3   : > { %v569_v9 = vadd.f32 %v885_v8, %v1287_v35  ;;  %v563_v10 = vpop.f32.mrb[3].mxu1 }
 0x1f4   : > { %v564_v11 = vadd.f32 %v1287_v35, %v563_v10 }
 0x1f5   : > { %652 = vst.msk [vmem:[%s1292_s4 + $0x98] sm:$0xff] %vm632_vm2, %v569_v9 }
 0x1f6   : > { %651 = vst.msk [vmem:[%s1292_s4 + $0x90] sm:$0xff] %vm632_vm2, %v564_v11 }
 0x1fa   : > { %v888_v12 = vpop.f32.mrb[4].mxu1 }
 0x1fb   : > { %v579_v13 = vadd.f32 %v888_v12, %v1287_v35  ;;  %v573_v14 = vpop.f32.mrb[5].mxu1 }
 0x1fc   : > { %v574_v15 = vadd.f32 %v1287_v35, %v573_v14 }
 0x1fd   : > { %654 = vst.msk [vmem:[%s1292_s4 + $0xa8] sm:$0xff] %vm632_vm2, %v579_v13 }
 0x1fe   : > { %653 = vst.msk [vmem:[%s1292_s4 + $0xa0] sm:$0xff] %vm632_vm2, %v574_v15 }
 0x202   : > { %v891_v16 = vpop.f32.mrb[6].mxu1 }
 0x203   : > { %v589_v17 = vadd.f32 %v891_v16, %v1287_v35  ;;  %v583_v18 = vpop.f32.mrb[7].mxu1 }
 0x204   : > { %v584_v19 = vadd.f32 %v1287_v35, %v583_v18 }
 0x205   : > { %656 = vst.msk [vmem:[%s1292_s4 + $0xb8] sm:$0xff] %vm632_vm2, %v589_v17 }
 0x206   : > { %655 = vst.msk [vmem:[%s1292_s4 + $0xb0] sm:$0xff] %vm632_vm2, %v584_v19 }
 0x20a   : > { %v894_v20 = vpop.f32.mrb[8].mxu1 }
 0x20b   : > { %v599_v21 = vadd.f32 %v894_v20, %v1287_v35  ;;  %v593_v22 = vpop.f32.mrb[9].mxu1 }
 0x20c   : > { %v594_v23 = vadd.f32 %v1287_v35, %v593_v22 }
 0x20d   : > { %658 = vst.msk [vmem:[%s1292_s4 + $0xc8] sm:$0xff] %vm632_vm2, %v599_v21 }
 0x20e   : > { %657 = vst.msk [vmem:[%s1292_s4 + $0xc0] sm:$0xff] %vm632_vm2, %v594_v23 }
 0x212   : > { %v897_v24 = vpop.f32.mrb[10].mxu1 }
 0x213   : > { %v609_v25 = vadd.f32 %v897_v24, %v1287_v35  ;;  %v603_v26 = vpop.f32.mrb[11].mxu1 }
 0x214   : > { %v604_v27 = vadd.f32 %v1287_v35, %v603_v26 }
 0x215   : > { %660 = vst.msk [vmem:[%s1292_s4 + $0xd8] sm:$0xff] %vm632_vm2, %v609_v25 }
 0x216   : > { %659 = vst.msk [vmem:[%s1292_s4 + $0xd0] sm:$0xff] %vm632_vm2, %v604_v27 }
 0x21a   : > { %v900_v28 = vpop.f32.mrb[12].mxu1 }
 0x21b   : > { %v619_v29 = vadd.f32 %v900_v28, %v1287_v35  ;;  %v613_v30 = vpop.f32.mrb[13].mxu1 }
 0x21c   : > { %v614_v31 = vadd.f32 %v1287_v35, %v613_v30 }
 0x21d   : > { %662 = vst.msk [vmem:[%s1292_s4 + $0xe8] sm:$0xff] %vm632_vm2, %v619_v29 }
 0x21e   : > { %661 = vst.msk [vmem:[%s1292_s4 + $0xe0] sm:$0xff] %vm632_vm2, %v614_v31 }
 0x222   : > { %v903_v32 = vpop.f32.mrb[14].mxu1 }
 0x223   : > { %v629_v33 = vadd.f32 %v903_v32, %v1287_v35  ;;  %v623_v34 = vpop.f32.mrb[15].mxu1 }
 0x224   : > { %v624_v36 = vadd.f32 %v1287_v35, %v623_v34 }
 0x225   : > { %664 = vst.msk [vmem:[%s1292_s4 + $0xf8] sm:$0xff] %vm632_vm2, %v629_v33 }
 0x226   : > { %663 = vst.msk [vmem:[%s1292_s4 + $0xf0] sm:$0xff] %vm632_vm2, %v624_v36 }
 0x227 PF: > { %s17_s17 = sadd.s32 1, %s1086_s17   ;;  %s1426_s12 = smov %s1070_s13 }
 0x228   : > { %p14_p9 = scmp.ge.s32.totalorder %s17_s17, 4   ;;  %s1427_s13 = smov %s1074_s14 }
 0x229   : > { %s1428_s14 = smov %s1201_s22  ;;  %s1429_s15 = smov %s1082_s16 }
 0x22a   : > { %s1430_s16 = smov %s1432_s25  ;;  %16 = sbr.rel (!%p14_p9) target bundleno = 5 (0x5), region = 76 }
 0x231   :  { %695 = vsyncpa [#allocation3], 1 }
 0x232   :  { %697 = vsyncpa [#allocation3 + $0x1], 1 }
 0x233   :  { %698 = vsyncpa [#allocation5], 1 }

</bundles_post_ra>
